<compile_context>
chip_gen: v7x
topology: tpu7x:2x2x1
jax: 0.10.0
libtpu: 0.0.40
codegen_flags: <defaults>
</compile_context>

<pallas_src>
import functools

import jax
import jax.numpy as jnp
from jax.experimental import pallas as pl
from jax.experimental.pallas import tpu as pltpu


# --------------------------------------------------------------------------
# Pass 1: global average pool (accumulated over HW tiles) + cSE gate MLP.
# --------------------------------------------------------------------------
def _pool_cse_kernel(x_ref, w1_ref, b1_ref, w2_ref, b2_ref, cgate_ref, acc_ref,
                     *, inv_hw):
    t = pl.program_id(1)

    @pl.when(t == 0)
    def _init():
        acc_ref[...] = jnp.zeros_like(acc_ref)

    x = x_ref[0]                                              # (C, T)
    # Partial spatial sum for this HW tile (lane reduce -> (C, 1) column).
    acc_ref[...] += jnp.sum(x, axis=1, keepdims=True)

    @pl.when(t == pl.num_programs(1) - 1)
    def _finalize():
        mean = acc_ref[...] * inv_hw                          # (C, 1)
        # Tiny cSE MLP, once per batch element (off the apply-sweep path).
        h = jnp.dot(w1_ref[...], mean,
                    preferred_element_type=jnp.float32) + b1_ref[...]   # (Cr, 1)
        h = jnp.maximum(h, 0.0)
        g = jnp.dot(w2_ref[...], h,
                    preferred_element_type=jnp.float32) + b2_ref[...]   # (C, 1)
        cgate_ref[0] = jax.nn.sigmoid(g)                      # (C, 1)


# --------------------------------------------------------------------------
# Pass 2: per-HW-tile sSE gate + fused combine  out = x * (cSE + sSE).
# --------------------------------------------------------------------------
def _apply_kernel(cgate_ref, x_ref, ws_ref, bs_ref, o_ref):
    x = x_ref[0]                                              # (C, T)
    # sSE: (1, C) @ (C, T) -> (1, T): lane-dense MXU output.
    s_gate = jax.nn.sigmoid(
        jnp.dot(ws_ref[...], x, preferred_element_type=jnp.float32)
        + bs_ref[0, 0])                                       # (1, T)
    c_gate = cgate_ref[0]                                     # (C, 1)
    # Single full-tile multiply: x * (c_gate + s_gate), broadcast to (C, T).
    o_ref[0] = x * (c_gate + s_gate)


def _pick_hw_tile(hw, c, itemsize=4, target_bytes=2 << 20):
    """Largest HW tile (multiple of 128, dividing HW) within a byte budget."""
    if hw % 128 != 0:
        return hw  # ragged spatial extent: fall back to full-extent block
    max_t = max(128, (target_bytes // (c * itemsize)) // 128 * 128)
    t = min(hw, max_t)
    while hw % t != 0:
        t -= 128
    return t


def scse2d_pallas(x_nchw, w1, b1, w2, b2, ws, bs, *, hw_tile=None):
    """x_nchw: (N, C, H, W) f32.  Weights in column layout:
       w1 (Cr, C), b1 (Cr, 1), w2 (C, Cr), b2 (C, 1), ws (1, C), bs (1, 1).
       Returns (N, C, H, W)."""
    N, C, H, W = x_nchw.shape
    HW = H * W
    Cr = w1.shape[0]

    # Free reshape (no data movement): NCHW -> (N, C, HW), HW on the lane axis.
    x = x_nchw.reshape(N, C, HW)

    if hw_tile is None:
        hw_tile = _pick_hw_tile(HW, C)
    assert HW % hw_tile == 0
    n_hw = HW // hw_tile

    # ---- pass 1: pooled cSE gate per batch element -> (N, C, 1) ----
    c_gate = pl.pallas_call(
        functools.partial(_pool_cse_kernel, inv_hw=1.0 / HW),
        out_shape=jax.ShapeDtypeStruct((N, C, 1), jnp.float32),
        grid=(N, n_hw),
        in_specs=[
            pl.BlockSpec((1, C, hw_tile), lambda n, t: (n, 0, t)),   # x tile
            pl.BlockSpec((Cr, C), lambda n, t: (0, 0)),              # w1
            pl.BlockSpec((Cr, 1), lambda n, t: (0, 0)),              # b1
            pl.BlockSpec((C, Cr), lambda n, t: (0, 0)),              # w2
            pl.BlockSpec((C, 1), lambda n, t: (0, 0)),               # b2
        ],
        out_specs=pl.BlockSpec((1, C, 1), lambda n, t: (n, 0, 0)),
        scratch_shapes=[pltpu.VMEM((C, 1), jnp.float32)],            # pool acc
        compiler_params=pltpu.CompilerParams(
            dimension_semantics=("parallel", "arbitrary")),
    )(x, w1, b1, w2, b2)

    # ---- pass 2: sSE gate + combine, fully parallel over (N, HW tiles) ----
    out = pl.pallas_call(
        _apply_kernel,
        out_shape=jax.ShapeDtypeStruct((N, C, HW), jnp.float32),
        grid=(N, n_hw),
        in_specs=[
            pl.BlockSpec((1, C, 1), lambda n, t: (n, 0, 0)),         # c_gate
            pl.BlockSpec((1, C, hw_tile), lambda n, t: (n, 0, t)),   # x tile
            pl.BlockSpec((1, C), lambda n, t: (0, 0)),               # ws row
            pl.BlockSpec(memory_space=pltpu.MemorySpace.SMEM),       # bs scalar
        ],
        out_specs=pl.BlockSpec((1, C, hw_tile), lambda n, t: (n, 0, t)),
        compiler_params=pltpu.CompilerParams(
            dimension_semantics=("parallel", "parallel")),
    )(c_gate, x, ws, bs)

    # Free reshape back to NCHW.
    return out.reshape(N, C, H, W)


# --------------------------------------------------------------------------
# Plain-JAX reference mirroring the PyTorch module (NCHW).
# --------------------------------------------------------------------------
def scse2d_reference(x_nchw, w1, b1, w2, b2, ws, bs):
    # cSE
    s = jnp.mean(x_nchw, axis=(2, 3))                        # (N, C)
    h = jnp.maximum(s @ w1.T + b1[:, 0], 0.0)                # (N, Cr)
    c_gate = jax.nn.sigmoid(h @ w2.T + b2[:, 0])             # (N, C)
    c_gate = c_gate[:, :, None, None]                        # (N, C, 1, 1)
    # sSE
    s_lin = jnp.einsum("nchw,c->nhw", x_nchw, ws[0]) + bs[0, 0]
    s_gate = jax.nn.sigmoid(s_lin)[:, None, :, :]            # (N, 1, H, W)
    return x_nchw * c_gate + x_nchw * s_gate


if __name__ == "__main__":
    # Small shapes consistent with the module: reduction=8 => C >= 8.
    N, C, H, W = 2, 16, 16, 16
    reduction = 8
    Cr = C // reduction  # 2

    key = jax.random.PRNGKey(0)
    kx, k1, kb1, k2, kb2, ks, kbs = jax.random.split(key, 7)

    x = jax.random.normal(kx, (N, C, H, W), dtype=jnp.float32)

    # Synthetic parameters (shapes from nn.Conv2d(..., ..., 1), column layout):
    #   cSE conv1: weight (Cr, C, 1, 1) -> (Cr, C);  bias (Cr,) -> (Cr, 1)
    #   cSE conv2: weight (C, Cr, 1, 1) -> (C, Cr);  bias (C,)  -> (C, 1)
    #   sSE conv : weight (1, C, 1, 1)  -> (1, C);   bias (1,)  -> (1, 1)
    w1 = jax.random.normal(k1, (Cr, C), dtype=jnp.float32) * 0.2
    b1 = jax.random.normal(kb1, (Cr, 1), dtype=jnp.float32) * 0.1
    w2 = jax.random.normal(k2, (C, Cr), dtype=jnp.float32) * 0.2
    b2 = jax.random.normal(kb2, (C, 1), dtype=jnp.float32) * 0.1
    ws = jax.random.normal(ks, (1, C), dtype=jnp.float32) * 0.2
    bs = jax.random.normal(kbs, (1, 1), dtype=jnp.float32) * 0.1

    # hw_tile=128 exercises the tiled pool-accumulator path (HW=256 -> 2 tiles).
    out = scse2d_pallas(x, w1, b1, w2, b2, ws, bs, hw_tile=128)
    out = jax.block_until_ready(out)

    ref = scse2d_reference(x, w1, b1, w2, b2, ws, bs)
    assert out.shape == (N, C, H, W)
    assert jnp.allclose(out, ref, atol=1e-5, rtol=1e-5), "mismatch vs reference"

    print("KERNEL_OK")
</pallas_src>

<mosaic_0001>
module attributes {stable_mosaic.version = 11 : i64} {
  func.func @_pool_cse_kernel(%arg0: i32, %arg1: i32, %arg2: memref<1x16x128xf32, #tpu.memory_space<vmem>>, %arg3: memref<2x16xf32, #tpu.memory_space<vmem>>, %arg4: memref<2x1xf32, #tpu.memory_space<vmem>>, %arg5: memref<16x2xf32, #tpu.memory_space<vmem>>, %arg6: memref<16x1xf32, #tpu.memory_space<vmem>>, %arg7: memref<1x16x1xf32, #tpu.memory_space<vmem>>, %arg8: memref<16x1xf32, #tpu.memory_space<vmem>>) attributes {dimension_semantics = [#tpu.dimension_semantics<parallel>, #tpu.dimension_semantics<arbitrary>], iteration_bounds = array<i64: 2, 2>, scalar_prefetch = 0 : i64, scratch_operands = 1 : i64, tpu.core_type = #tpu.core_type<tc>, window_params = [{transform_indices = @transform_0, window_bounds = array<i64: 1, 16, 128>}, {pipeline_mode = #tpu.pipeline_mode<synchronous>, transform_indices = @transform_1, window_bounds = array<i64: 2, 16>}, {pipeline_mode = #tpu.pipeline_mode<synchronous>, transform_indices = @transform_2, window_bounds = array<i64: 2, 1>}, {pipeline_mode = #tpu.pipeline_mode<synchronous>, transform_indices = @transform_3, window_bounds = array<i64: 16, 2>}, {pipeline_mode = #tpu.pipeline_mode<synchronous>, transform_indices = @transform_4, window_bounds = array<i64: 16, 1>}, {transform_indices = @transform_5, window_bounds = array<i64: 1, 16, 1>}]} {
    %c0_i32 = arith.constant 0 : i32
    %0 = arith.cmpi eq, %arg1, %c0_i32 : i32
    %1 = arith.extui %0 : i1 to i32
    %c0_i32_0 = arith.constant 0 : i32
    %2 = arith.cmpi ne, %1, %c0_i32_0 : i32
    scf.if %2 {
      %cst_8 = arith.constant 0.000000e+00 : f32
      %13 = vector.broadcast %cst_8 : f32 to vector<16x1xf32>
      %c0_9 = arith.constant 0 : index
      %c0_10 = arith.constant 0 : index
      %14 = vector.load %arg8[%c0_9, %c0_10] : memref<16x1xf32, #tpu.memory_space<vmem>>, vector<16x1xf32>
      tpu.vector_store %arg8[%c0_9, %c0_10], %13 {strides = array<i32>} : memref<16x1xf32, #tpu.memory_space<vmem>>, vector<16x1xf32>,
    } else {
    }
    %c0 = arith.constant 0 : index
    %c0_1 = arith.constant 0 : index
    %c0_2 = arith.constant 0 : index
    %3 = vector.load %arg2[%c0, %c0_1, %c0_2] : memref<1x16x128xf32, #tpu.memory_space<vmem>>, vector<1x16x128xf32>
    %4 = vector.shape_cast %3 : vector<1x16x128xf32> to vector<16x128xf32>
    %c0_3 = arith.constant 0 : index
    %c0_4 = arith.constant 0 : index
    %5 = vector.load %arg8[%c0_3, %c0_4] : memref<16x1xf32, #tpu.memory_space<vmem>>, vector<16x1xf32>
    %cst = arith.constant dense<0.000000e+00> : vector<16xf32>
    %6 = vector.multi_reduction <add>, %4, %cst [1] : vector<16x128xf32> to vector<16xf32>
    %7 = vector.shape_cast %6 : vector<16xf32> to vector<16x1xf32>
    %8 = arith.addf %5, %7 : vector<16x1xf32>
    %c0_5 = arith.constant 0 : index
    %c0_6 = arith.constant 0 : index
    %9 = vector.load %arg8[%c0_5, %c0_6] : memref<16x1xf32, #tpu.memory_space<vmem>>, vector<16x1xf32>
    tpu.vector_store %arg8[%c0_5, %c0_6], %8 {strides = array<i32>} : memref<16x1xf32, #tpu.memory_space<vmem>>, vector<16x1xf32>,
    %c1_i32 = arith.constant 1 : i32
    %10 = arith.cmpi eq, %arg1, %c1_i32 : i32
    %11 = arith.extui %10 : i1 to i32
    %c0_i32_7 = arith.constant 0 : i32
    %12 = arith.cmpi ne, %11, %c0_i32_7 : i32
    scf.if %12 {
      %c0_8 = arith.constant 0 : index
      %c0_9 = arith.constant 0 : index
      %13 = vector.load %arg8[%c0_8, %c0_9] : memref<16x1xf32, #tpu.memory_space<vmem>>, vector<16x1xf32>
      %cst_10 = arith.constant 3.906250e-03 : f32
      %14 = vector.broadcast %cst_10 : f32 to vector<16x1xf32>
      %15 = arith.mulf %13, %14 : vector<16x1xf32>
      %c0_11 = arith.constant 0 : index
      %c0_12 = arith.constant 0 : index
      %16 = vector.load %arg3[%c0_11, %c0_12] : memref<2x16xf32, #tpu.memory_space<vmem>>, vector<2x16xf32>
      %cst_13 = arith.constant dense<0.000000e+00> : vector<2x1xf32>
      %17 = tpu.matmul %16, %15, %cst_13 {dimension_numbers = #tpu.dot_dimension_numbers<[1], [0], [0], [1], [0, 0, 1, 1], [], []>} : vector<2x16xf32>, vector<16x1xf32>, vector<2x1xf32> -> vector<2x1xf32>
      %c0_14 = arith.constant 0 : index
      %c0_15 = arith.constant 0 : index
      %18 = vector.load %arg4[%c0_14, %c0_15] : memref<2x1xf32, #tpu.memory_space<vmem>>, vector<2x1xf32>
      %19 = arith.addf %17, %18 : vector<2x1xf32>
      %cst_16 = arith.constant 0.000000e+00 : f32
      %20 = vector.broadcast %cst_16 : f32 to vector<2x1xf32>
      %21 = arith.maximumf %19, %20 : vector<2x1xf32>
      %c0_17 = arith.constant 0 : index
      %c0_18 = arith.constant 0 : index
      %22 = vector.load %arg5[%c0_17, %c0_18] : memref<16x2xf32, #tpu.memory_space<vmem>>, vector<16x2xf32>
      %cst_19 = arith.constant dense<0.000000e+00> : vector<16x1xf32>
      %23 = tpu.matmul %22, %21, %cst_19 {dimension_numbers = #tpu.dot_dimension_numbers<[1], [0], [0], [1], [0, 0, 1, 1], [], []>} : vector<16x2xf32>, vector<2x1xf32>, vector<16x1xf32> -> vector<16x1xf32>
      %c0_20 = arith.constant 0 : index
      %c0_21 = arith.constant 0 : index
      %24 = vector.load %arg6[%c0_20, %c0_21] : memref<16x1xf32, #tpu.memory_space<vmem>>, vector<16x1xf32>
      %25 = arith.addf %23, %24 : vector<16x1xf32>
      %26 = arith.negf %25 : vector<16x1xf32>
      %27 = math.exp %26 : vector<16x1xf32>
      %cst_22 = arith.constant 1.000000e+00 : f32
      %28 = vector.broadcast %cst_22 : f32 to vector<16x1xf32>
      %29 = arith.addf %28, %27 : vector<16x1xf32>
      %30 = arith.divf %28, %29 : vector<16x1xf32>
      %c0_23 = arith.constant 0 : index
      %c0_24 = arith.constant 0 : index
      %c0_25 = arith.constant 0 : index
      %31 = vector.load %arg7[%c0_23, %c0_24, %c0_25] : memref<1x16x1xf32, #tpu.memory_space<vmem>>, vector<1x16x1xf32>
      %32 = vector.shape_cast %31 : vector<1x16x1xf32> to vector<16x1xf32>
      %33 = vector.shape_cast %30 : vector<16x1xf32> to vector<1x16x1xf32>
      tpu.vector_store %arg7[%c0_23, %c0_24, %c0_25], %33 {strides = array<i32>} : memref<1x16x1xf32, #tpu.memory_space<vmem>>, vector<1x16x1xf32>,
    } else {
    }
    return
  }
  func.func @transform_0(%arg0: i32, %arg1: i32) -> (i32, i32, i32) {
    %c0_i32 = arith.constant 0 : i32
    %c0_i32_0 = arith.constant 0 : i32
    return %arg0, %c0_i32, %arg1 : i32, i32, i32
  }
  func.func @transform_1(%arg0: i32, %arg1: i32) -> (i32, i32) {
    %c0_i32 = arith.constant 0 : i32
    %c0_i32_0 = arith.constant 0 : i32
    %c0_i32_1 = arith.constant 0 : i32
    return %c0_i32, %c0_i32_0 : i32, i32
  }
  func.func @transform_2(%arg0: i32, %arg1: i32) -> (i32, i32) {
    %c0_i32 = arith.constant 0 : i32
    %c0_i32_0 = arith.constant 0 : i32
    %c0_i32_1 = arith.constant 0 : i32
    return %c0_i32, %c0_i32_0 : i32, i32
  }
  func.func @transform_3(%arg0: i32, %arg1: i32) -> (i32, i32) {
    %c0_i32 = arith.constant 0 : i32
    %c0_i32_0 = arith.constant 0 : i32
    %c0_i32_1 = arith.constant 0 : i32
    return %c0_i32, %c0_i32_0 : i32, i32
  }
  func.func @transform_4(%arg0: i32, %arg1: i32) -> (i32, i32) {
    %c0_i32 = arith.constant 0 : i32
    %c0_i32_0 = arith.constant 0 : i32
    %c0_i32_1 = arith.constant 0 : i32
    return %c0_i32, %c0_i32_0 : i32, i32
  }
  func.func @transform_5(%arg0: i32, %arg1: i32) -> (i32, i32, i32) {
    %c0_i32 = arith.constant 0 : i32
    %c0_i32_0 = arith.constant 0 : i32
    %c0_i32_1 = arith.constant 0 : i32
    return %arg0, %c0_i32, %c0_i32_0 : i32, i32, i32
  }
}

</mosaic_0001>

<bundles_post_ra>
// kernel: tpu_custom_call.1
= control target key start
LH: loop header
LB: loop body
LE: loop exit
PB: predicated region body
PF: predicated region fallthrough
CT: control target
= control target key end

     0   :  { %10 = vsyncpa [#allocation4], 0  ;;  %s993_s0 = inlined_call_operand.hbm [shape: f32[2,16,256], index: 0, kind: input, shape index: {}]   ;;  %s994_s1 = inlined_call_operand.vmem [shape: f32[2,16], index: 1, kind: input, shape index: {}]   ;;  %s995_s2 = inlined_call_operand.vmem [shape: f32[2,1], index: 2, kind: input, shape index: {}]   ;;  %s996_s3 = inlined_call_operand.vmem [shape: f32[16,2], index: 3, kind: input, shape index: {}]   ;;  %s997_s4 = inlined_call_operand.vmem [shape: f32[16,1], index: 4, kind: input, shape index: {}]   ;;  %s998_s5 = inlined_call_operand.vmem [shape: f32[2,16,1], index: 5, kind: output, shape index: {}]  }
   0x1   :  { %12 = vsyncpa [#allocation4 + $0x1], 0  ;;  %s814_s18 = smov 0   ;;  %s816_s19 = smov 0  }
   0x2   :  { %s818_s20 = smov 0   ;;  %s820_s21 = smov 0  }
   0x3   :  { %s822_s22 = smov 0   ;;  %s824_s23 = smov 0  }
   0x4   :  { %s826_s24 = smov 0   ;;  %s828_s25 = smov 0  }
   0x5 LB: > { %s549_s26 = sadd.s32 4294967295, %s774_s25   ;;  %s27_s27 = sadd.s32 1, %s766_s23  ;;  %s774_s25 = sphi %s828_s25, %s18_s25   ;;  %s770_s24 = sphi %s826_s24, %s1012_s24   ;;  %s766_s23 = sphi %s824_s23, %s1011_s23   ;;  %s762_s22 = sphi %s822_s22, %s1010_s22   ;;  %s758_s21 = sphi %s820_s21, %s1009_s21   ;;  %s754_s20 = sphi %s818_s20, %s1008_s20   ;;  %s750_s19 = sphi %s816_s19, %s1007_s19   ;;  %s746_s18 = sphi %s814_s18, %s1006_s18  }
   0x6   : > { %p28_p0 = scmp.ge.s32.totalorder %s27_s27, 2  ;;  %s30_s28 = sadd.s32 1, %s770_s24 }
   0x7   : > { %s39_s29 = sadd.s32 1, %s754_s20  ;;  %p46_p1 = scmp.ne.s32.totalorder %s754_s20, %s750_s19 }
   0x8   : > { %s1014_s27 = smov (%p28_p0, %s27_s27), 0  ;;  %s1016_s28 = smov (!%p28_p0, %s30_s28), %s770_s24 }
   0x9   : > { %1000 = sst [smem:[#allocation6_spill]] %s1014_s27  ;;  %s35_s30 = ssub.s32 %s766_s23, %s1014_s27 }
   0xa   : > { %p47_p2 = scmp.eq.s32.totalorder %s774_s25, 0  ;;  %p32_p3 = scmp.ge.s32.totalorder %s1016_s28, 2 }
   0xb   : > { %p52_p4 = scmp.ne.s32.totalorder %s750_s19, %s746_s18  ;;  %p53_p6 = scmp.eq.s32.totalorder %s549_s26, 0 }
   0xc   : > { %p865_p5 = por %p47_p2, %p46_p1  ;;  %s1018_s28 = smov (%p32_p3, %s1016_s28), 0 }
   0xd   : > { %p871_p7 = por %p53_p6, %p52_p4  ;;  %s34_s8 = ssub.s32 %s770_s24, %s1018_s28 }
   0xe   : > { %p598_p8 = scmp.lt.s32.totalorder %s774_s25, 4  ;;  %s36_s9 = sor.u32 %s35_s30, %s34_s8 }
   0xf   : > { %s198_s10 = sand.u32 1, %s754_s20   ;;  %p37_p9 = scmp.eq.s32.totalorder %s36_s9, 0 }
  0x10   : > { %s553_s11 = sshll.u32 %s198_s10, 4  ;;  %s554_s12 = sshll.u32 %s770_s24, 2 }
  0x11   : > { %s881_s13 = scalar_select %p37_p9, %s754_s20, %s39_s29  }
  0x12   : > { %s207_s14 = sadd.s32 %s766_s23, %s554_s12  ;;  %s202_s16 = scalar_lea.vmem [#allocation3], %s553_s11 }
  0x13   : > { %s555_s15 = sshll.u32 %s207_s14, 7  ;;  %s210_s17 = sshll.u32 %s202_s16, 4  ;;  %s889_s17 = int_to_ptr.vmem [resolvable:$true] %s210_s17 }
  0x14   : > { %s887_s27 = scalar_lea.hbm %s993_s0, %s555_s15  ;;  %p895_p10 = pnand %p598_p8, %p865_p5 }
  0x15   : > { %s900_s30 = scalar_lea.sflag [#allocation4], %s198_s10  ;;  %s678_s8 = scalar_lea.hbm %s887_s27, 256 }
  0x16   : > { %p679_p12 = scmp.ne.s32.totalorder %s887_s27, %s678_s8  ;;  %p680_p13 = pneg %p895_p10 }
  0x17   : > { %s683_s11 = scalar_lea.hbm %s993_s0, 1024  ;;  %p684_p2 = scmp.lt.u32.totalorder %s887_s27, %s993_s0 }
  0x18   : > { %p681_p0 = pnand %p680_p13, %p679_p12  ;;  %p685_p3 = scmp.lt.u32.totalorder %s683_s11, %s678_s8 }
  0x19   : > { %p687_p5 = scmp.lt.u32.totalorder %s678_s8, %s887_s27 }
  0x1a   : > { %p682_p1 = pneg %p681_p0  ;;  %p686_p4 = por %p685_p3, %p684_p2 }
  0x1c   : > { %p688_p6 = por %p687_p5, %p686_p4 }
  0x1e   : > { %p689_p8 = pnand %p688_p6, %p682_p1 }
  0x20   : > { %692 = shalt.err (!%p689_p8)
}
  0x21   : > { %s693_s10 = scalar_lea.vmem %s889_s17, 256  ;;  %s776_s15 = smov [#allocation3]  }
  0x22   : > { %p694_p9 = scmp.ne.s32.totalorder %s889_s17, %s693_s10  ;;  %s698_s16 = sshll.u32 %s776_s15, 4  ;;  %s699_s16 = int_to_ptr.vmem [resolvable:$false] %s698_s16 }
  0x23   : > { %s700_s18 = scalar_lea.vmem %s699_s16, 512  ;;  %p701_p11 = scmp.lt.s32.totalorder %s889_s17, %s699_s16 }
  0x24   : > { %p696_p12 = pnand %p694_p9, %p680_p13  ;;  %p702_p2 = scmp.lt.s32.totalorder %s700_s18, %s693_s10 }
  0x26   : > { %p697_p0 = pneg %p696_p12  ;;  %p703_p3 = por %p702_p2, %p701_p11 }
  0x28   : > { %p704_p4 = pnand %p703_p3, %p697_p0 }
  0x2a   : > { %707 = shalt.err (!%p704_p4)
}
  0x2b   : > { %s777_s26 = smov 256   ;;  %s778_s8 = smov 128  }
  0x2c   : > { %s779_s9 = smov 8   ;;  %p218_p13 = scmp.lt.s32.totalorder %s774_s25, 5 }
  0x2d   : > { %597 = dma.hbm_to_vmem [thread:$0]  (!%p895_p10), %s887_s27, 256, %s889_s17, %s900_s30, %s777_s26, %s778_s8, %s779_s9  }
  0x2e   : > { %p1004_p1 = scmp.ge.s32.totalorder %s774_s25, 1 }
  0x30   : > { %p219_p5 = pnand %p1004_p1, %p218_p13 }
  0x31   : > { %s224_s6 = sand.u32 (!%p219_p5), 1, %s750_s19  }
  0x32   : > { %222 = sbr.rel (%p219_p5) target bundleno = 691 (0x2b3), region = 40  ;;  %s557_s11 = sshll.u32 (!%p219_p5), %s224_s6, 4 }
  0x33   : > { %s225_s12 = scalar_lea.sflag (!%p219_p5), [#allocation4], %s224_s6  ;;  %s228_s14 = scalar_lea.vmem (!%p219_p5), [#allocation3], %s557_s11 }
  0x39   : > { %741 = dma.done.wait (%p871_p7), %s225_s12, 256  }
  0x3a   : > { %743 = vsyncadd (%p871_p7), %s225_s12, 4294967040  ;;  %p255_p11 = scmp.lt.s32.totalorder %s762_s22, 1  ;;  %p560_p10 = scmp.ne.s32.totalorder %s758_s21, 0 }
  0x3b   : > { %vm264_vm0 = vcmask (!%p560_p10), 7168   ;;  %v780_v0 = vmov (!%p560_p10), 0.0  }
  0x3c   : > { %s1020_s22 = smov (!%p255_p11, %s762_s22), 1  ;;  %263 = sbr.rel (%p560_p10) target bundleno = 67 (0x43), region = 48 }
  0x3d   : > { %s570_s27 = sshll.u32 %s1020_s22, 4  ;;  %265 = vst.msk [vmem:[#allocation2] sm:$0xff] (!%p560_p10), %vm264_vm0, %v780_v0  ;;  %266 = vst.msk [vmem:[#allocation2 + $0x8] sm:$0xff] (!%p560_p10), %vm264_vm0, %v780_v0 }
  0x3e   : > { %s941_s30 = scalar_lea.vmem %s998_s5, %s570_s27 }
  0x43 PF: > { %v267_v1 = vld [vmem:[%s228_s14] sm:$0xff]  ;;  %v268_v2 = vld [vmem:[%s228_s14 + $0x8] sm:$0xff]  ;;  %vm277_vm1 = vcmask 7168   ;;  %p561_p7 = scmp.ne.s32.totalorder %s758_s21, 1 }
  0x44   : > { %271 = vadd.xlane.f32.xlu0 %v267_v1  ;;  %v269_v3 = vld [vmem:[#allocation2] sm:$0xff]  ;;  %v270_v6 = vld [vmem:[#allocation2 + $0x8] sm:$0xff]  ;;  %v781_v11 = vmov (!%p561_p7), 0.0|0.0   ;;  %vm782_vm2 = vmmov (!%p561_p7), 0   ;;  %v783_v14 = vmov (!%p561_p7), 0.0   ;;  %vm290_vm3 = vcmask (!%p561_p7), 130048  }
  0x45   : > { %589 = vmatprep.subr.bf16.mxu0 (!%p561_p7), %v781_v11  ;;  %581 = vmatprep.mubr.msk.f32.mxu0 (!%p561_p7), %vm782_vm2, %v783_v14  ;;  %v288_v16 = vld [vmem:[%s994_s1] sm:$0x3] (!%p561_p7)  ;;  %vm369_vm4 = vcmask (!%p561_p7), 15360   ;;  %vm376_vm5 = vcmask (!%p561_p7), 1041408   ;;  %v366_v23 = vld [vmem:[%s996_s3 + $0x8] sm:$0xff] (!%p561_p7) }
  0x46   : > { %v365_v17 = vld [vmem:[%s996_s3] sm:$0xff] (!%p561_p7)  ;;  %v368_v24 = vld [vmem:[%s997_s4 + $0x8] sm:$0xff] (!%p561_p7) }
  0x47   : > { %586 = vmatprep.mubr.msk.f32.mxu1 (!%p561_p7), %vm369_vm4, %v365_v17  ;;  %v289_v18 = vld [vmem:[%s995_s2] sm:$0x3] (!%p561_p7) }
  0x48   : > { %273 = vadd.xlane.f32.xlu0 %v268_v2  ;;  %v367_v25 = vld [vmem:[%s997_s4] sm:$0xff] (!%p561_p7) }
  0xd1   : > { %v272_v4 = vpop.xlane.xlu0 %271 }
  0xd2   : > { %v275_v5 = vadd.f32 %v272_v4, %v269_v3  ;;  %283 = sbr.rel (%p561_p7) target bundleno = 691 (0x2b3), region = 52 }
  0xd4   : > { %278 = vst.msk [vmem:[#allocation2] sm:$0xff] %vm277_vm1, %v275_v5 }
  0xd5   : > { %v274_v7 = vpop.xlane.xlu0 %273 }
  0xd6   : > { %v276_v8 = vadd.f32 %v274_v7, %v270_v6 }
  0xd8   : > { %279 = vst.msk [vmem:[#allocation2 + $0x8] sm:$0xff] %vm277_vm1, %v276_v8 }
  0xdb   : > { %v284_v9 = vld [vmem:[#allocation2] sm:$0xff] }
  0xdc   : > { %v286_v12 = vmul.f32 0.00390625, %v284_v9 }
  0xdf   : > { %v285_v10 = vld [vmem:[#allocation2 + $0x8] sm:$0xff] }
  0xe0   : > { %v287_v13 = vmul.f32 0.00390625, %v285_v10 }
  0xe2   : > { %v590_v15 = vpack.c.bf16 %v287_v13, %v286_v12 }
  0xe4   : > { %591 = vmatpush3.bf16.msra.mxu0 %v590_v15 }
  0xe7   : > { %582 = vmatmul.mubr.msk.f32.vlgmr.msra.gmra.mrb[0].mxu0 %vm290_vm3, %v288_v16 }
 0x1ba   : > { %v360_v19 = vpop.f32.mrb[0].mxu0 }
 0x1bb   : > { %v361_v20 = vadd.f32 %v360_v19, %v289_v18  ;;  %v583_v21 = vpop.f32.mrb[1].mxu0 }
 0x1bd   : > { %v364_v22 = vmax.f32 %v361_v20, 0.0 }
 0x1bf   : > { %584 = vmatprep.subr.msk.mxu1 %vm376_vm5, %v364_v22 }
 0x1c0   : > { %585 = vmatpush3.msk.msra.mxu1 %vm376_vm5, %v364_v22 }
 0x1c1   : > { %587 = vmatmul.mubr.msk.f32.vlgmr.msra.gmra.mrb[0].mxu1 %vm369_vm4, %v366_v23 }
 0x294   : > { %v588_v26 = vpop.f32.mrb[0].mxu1 }
 0x295   : > { %v452_v27 = vadd.f32 %v588_v26, %v368_v24  ;;  %v446_v28 = vpop.f32.mrb[1].mxu1 }
 0x296   : > { %v447_v29 = vadd.f32 %v446_v28, %v367_v25 }
 0x297   : > { %v567_v30 = vmul.f32 -1.442695, %v452_v27 }
 0x298   : > { %v566_v31 = vmul.f32 -1.442695, %v447_v29 }
 0x299   : > { %670 = vpow2.f32 %v567_v30 }
 0x29a   : > { %672 = vpow2.f32 %v566_v31 }
 0x2a3   : > { %v671_v32 = vpop.eup %670 }
 0x2a4   : > { %v673_v33 = vpop.eup %672  ;;  %v462_v34 = vadd.f32 1.0, %v671_v32 }
 0x2a5   : > { %v461_v35 = vadd.f32 1.0, %v673_v33 }
 0x2a6   : > { %674 = vrcp.f32 %v462_v34 }
 0x2a7   : > { %676 = vrcp.f32 %v461_v35 }
 0x2b0   : > { %v675_v36 = vpop.eup %674 }
 0x2b1   : > { %v677_v37 = vpop.eup %676  ;;  %468 = vst.msk [vmem:[%s941_s30 + $0x8] sm:$0xff] %vm277_vm1, %v675_v36 }
 0x2b2   : > { %467 = vst.msk [vmem:[%s941_s30] sm:$0xff] %vm277_vm1, %v677_v37 }
 0x2b3 PF: > { %s18_s25 = sadd.s32 1, %s774_s25   ;;  %s1005_s12 = sld [smem:[#allocation6_spill]] }
 0x2b4   : > { %p15_p6 = scmp.ge.s32.totalorder %s18_s25, 6   ;;  %s1006_s18 = smov %s750_s19 }
 0x2b5   : > { %s1007_s19 = smov %s754_s20  ;;  %s1008_s20 = smov %s881_s13 }
 0x2b6   : > { %s1009_s21 = smov %s766_s23  ;;  %s1010_s22 = smov %s770_s24 }
 0x2b7   : > { %s1012_s24 = smov %s1018_s28  ;;  %17 = sbr.rel (!%p15_p6) target bundleno = 5 (0x5), region = 88 }
 0x2b9   : > { %s1011_s23 = smov %s1005_s12 }
 0x2be   :  { %490 = vsyncpa [#allocation4], 1 }
 0x2bf   :  { %492 = vsyncpa [#allocation4 + $0x1], 1 }

</bundles_post_ra>
